<compile_context>
chip_gen: v5e
topology: v5e:2x2
jax: 0.10.0
libtpu: 0.0.40
codegen_flags: <defaults>
</compile_context>

<pallas_src>
import functools

import jax
import jax.numpy as jnp
from jax.experimental import pallas as pl
from jax.experimental.pallas import tpu as pltpu


def _round_up(n, m):
    return ((n + m - 1) // m) * m


def _cdiv(a, b):
    return (a + b - 1) // b


# ----------------------------- chip configuration ---------------------------
def _tpu_generation():
    try:
        kind = jax.devices()[0].device_kind.lower()
    except Exception:
        return "unknown"
    if "v5" in kind:
        return "v5"
    if "v6" in kind:
        return "v6"
    if "v7" in kind or "7x" in kind:
        return "v7"
    return "unknown"


def _chip_config():
    """(generation, block_m, vmem_limit_bytes)."""
    gen = _tpu_generation()
    if gen in ("v6", "v7"):
        block_m = 256          # 2x256^2 MXU: 128-row tiles half-fill it
    else:
        block_m = 128          # v5e: 4x128^2 MXU already saturated at 128
    if gen == "v7":
        vmem_limit = 48 * 1024 * 1024   # v7x: 64 MiB physical, leave headroom
    elif gen in ("v5", "v6"):
        vmem_limit = 64 * 1024 * 1024   # 128 MiB physical
    else:
        vmem_limit = 32 * 1024 * 1024
    return gen, block_m, vmem_limit


# --------------------------------- kernel -----------------------------------
def _qnet_kernel(x_ref, w1_ref, b1_ref, w2_ref, b2_ref, out_ref):
    # In-kernel bf16 cast of x (VPU op, hidden under MXU) instead of a
    # materialized padded bf16 copy of x in HBM every call.
    x = x_ref[...].astype(jnp.bfloat16)
    # hidden = relu(x @ W1 + b1): bf16 MXU matmul, f32 accumulate + epilogue.
    h = jnp.dot(x, w1_ref[...], preferred_element_type=jnp.float32)
    h = jnp.maximum(h + b1_ref[...], 0.0)             # (bm, H_p) + (1, H_p)
    # out = hidden @ W2 + b2: bf16 matmul, f32 accumulate.
    o = jnp.dot(h.astype(jnp.bfloat16), w2_ref[...],
                preferred_element_type=jnp.float32)
    out_ref[...] = (o + b2_ref[...]).astype(out_ref.dtype)


def _resident_spec(block_shape, single_buffer):
    """BlockSpec for a grid-invariant (weight/bias) operand."""
    if single_buffer and hasattr(pl, "Buffered"):
        try:
            return pl.BlockSpec(block_shape, lambda i: (0, 0),
                                pipeline_mode=pl.Buffered(1))
        except TypeError:
            pass
    return pl.BlockSpec(block_shape, lambda i: (0, 0))


@functools.partial(
    jax.jit,
    static_argnames=("block_m", "vmem_limit_bytes", "min_steps",
                     "single_buffer_weights"))
def _qnet_forward_padded(x, w1, b1, w2, b2, *, block_m, vmem_limit_bytes,
                         min_steps, single_buffer_weights):
    """Fused forward on pre-padded weights. Returns (B_p, O_p) f32."""
    B, In = x.shape
    H_p = w1.shape[1]
    O_p = w2.shape[1]

    # Even batch tiling: spread padding across steps instead of one fat pad.
    n_steps = max(_cdiv(B, block_m), min_steps)
    bm = _round_up(_cdiv(B, n_steps), 8)
    n_steps = max(min_steps, _cdiv(B, bm))
    B_p = bm * n_steps
    if B_p != B:
        x = jnp.pad(x, ((0, B_p - B), (0, 0)))   # batch-axis pad only

    cost = pl.CostEstimate(
        flops=2 * B_p * In * H_p + 2 * B_p * H_p * O_p,
        transcendentals=0,
        bytes_accessed=(B_p * In * 4 + w1.size * 2 + b1.size * 4
                        + w2.size * 2 + b2.size * 4 + B_p * O_p * 4),
    )

    out_p = pl.pallas_call(
        _qnet_kernel,
        out_shape=jax.ShapeDtypeStruct((B_p, O_p), jnp.float32),
        grid_spec=pl.GridSpec(
            grid=(n_steps,),
            in_specs=[
                # x: batch-tiled; feature dim is the full (unpadded) In.
                pl.BlockSpec((bm, In), lambda i: (i, 0)),
                _resident_spec((In, H_p), single_buffer_weights),   # W1
                _resident_spec((1, H_p), single_buffer_weights),    # b1
                _resident_spec((H_p, O_p), single_buffer_weights),  # W2
                _resident_spec((1, O_p), single_buffer_weights),    # b2
            ],
            out_specs=pl.BlockSpec((bm, O_p), lambda i: (i, 0)),
        ),
        compiler_params=pltpu.CompilerParams(
            dimension_semantics=("parallel",),      # 2 TCs on v7x; neutral else
            vmem_limit_bytes=vmem_limit_bytes),
        cost_estimate=cost,
    )(x, w1, b1, w2, b2)
    return out_p


# ----------------------------- module-like wrapper ---------------------------
class LinearQNet:
    """JAX/Pallas port of the PyTorch Linear_QNet forward pass.

    Weights are expected in (in, out) layout (transpose of PyTorch's
    (out, in)). Feature-dim padding + bf16 cast are done ONCE here, not per
    forward call.
    """

    def __init__(self, w1, b1, w2, b2):
        In, H = w1.shape
        H2, O = w2.shape
        assert H == H2, "hidden dims of linear1/linear2 must match"
        self.in_features, self.hidden_features, self.out_features = In, H, O

        H_p = _round_up(max(H, 128), 128)
        O_p = _round_up(max(O, 128), 128)
        # W1 keeps its unpadded In axis (kernel contracts over the true input
        # width); H / O are zero-padded to lane-dense multiples of 128 (zeros
        # are exact for matmul / bias / ReLU). Matmul operands in bf16,
        # biases in f32 for the f32 epilogue.
        self.w1 = jnp.pad(w1, ((0, 0), (0, H_p - H))).astype(jnp.bfloat16)
        self.b1 = jnp.pad(jnp.reshape(b1, (1, H)),
                          ((0, 0), (0, H_p - H))).astype(jnp.float32)
        self.w2 = jnp.pad(w2, ((0, H_p - H), (0, O_p - O))).astype(jnp.bfloat16)
        self.b2 = jnp.pad(jnp.reshape(b2, (1, O)),
                          ((0, 0), (0, O_p - O))).astype(jnp.float32)

        self._gen, self.block_m, self.vmem_limit_bytes = _chip_config()
        self._single_buffer = True

    def __call__(self, x):
        B = x.shape[0]
        # v7x: guarantee >=2 grid steps for non-tiny batches so the "parallel"
        # batch axis can actually shard across both TensorCores.
        min_steps = 2 if (self._gen == "v7" and B > 16) else 1
        fwd = functools.partial(
            _qnet_forward_padded, x, self.w1, self.b1, self.w2, self.b2,
            block_m=self.block_m, vmem_limit_bytes=self.vmem_limit_bytes,
            min_steps=min_steps)
        try:
            out_p = fwd(single_buffer_weights=self._single_buffer)
        except Exception:
            if not self._single_buffer:
                raise
            # Fallback if Buffered(1) single-buffering is unsupported.
            self._single_buffer = False
            out_p = fwd(single_buffer_weights=False)
        return out_p[:B, :self.out_features]

    # TODO(synk): PyTorch's save() (torch.save of the state dict) is file I/O
    # with no Pallas equivalent; persist self.w1/b1/w2/b2 externally if needed.


def init_params(key, input_size, hidden_size, output_size):
    """Init mirroring nn.Linear's U(-1/sqrt(fan_in), 1/sqrt(fan_in))."""
    k1, k2, k3, k4 = jax.random.split(key, 4)
    bound1 = 1.0 / jnp.sqrt(jnp.float32(input_size))
    bound2 = 1.0 / jnp.sqrt(jnp.float32(hidden_size))
    # Stored as (in, out) — transpose of PyTorch's (out, in) layout.
    w1 = jax.random.uniform(k1, (input_size, hidden_size), jnp.float32, -bound1, bound1)
    b1 = jax.random.uniform(k2, (1, hidden_size), jnp.float32, -bound1, bound1)
    w2 = jax.random.uniform(k3, (hidden_size, output_size), jnp.float32, -bound2, bound2)
    b2 = jax.random.uniform(k4, (1, output_size), jnp.float32, -bound2, bound2)
    return w1, b1, w2, b2


if __name__ == "__main__":
    # Small shapes consistent with Linear_QNet(inputSize, hiddenSize, outputSize)
    # (snake-game-like dims: none are multiples of 8/128, exercising padding).
    batch, input_size, hidden_size, output_size = 4, 11, 32, 3

    key = jax.random.PRNGKey(0)
    kx, kp = jax.random.split(key)
    x = jax.random.normal(kx, (batch, input_size), jnp.float32)
    w1, b1, w2, b2 = init_params(kp, input_size, hidden_size, output_size)

    net = LinearQNet(w1, b1, w2, b2)   # one-time weight pad + bf16 cast
    out = jax.block_until_ready(net(x))

    # Reference in plain f32 JAX (same math as the PyTorch forward).
    ref = jnp.maximum(x @ w1 + b1, 0.0) @ w2 + b2
    assert out.shape == (batch, output_size)
    # bf16 matmul operands -> relaxed tolerance vs. the f32 reference.
    assert jnp.allclose(out, ref, atol=5e-2, rtol=5e-2), (
        f"max abs err {jnp.max(jnp.abs(out - ref))}")

    print("KERNEL_OK")
</pallas_src>

<mosaic_0001>
module attributes {stable_mosaic.version = 11 : i64} {
  func.func @_qnet_kernel(%arg0: i32, %arg1: memref<8x11xf32, #tpu.memory_space<vmem>>, %arg2: memref<11x128xbf16, #tpu.memory_space<vmem>>, %arg3: memref<1x128xf32, #tpu.memory_space<vmem>>, %arg4: memref<128x128xbf16, #tpu.memory_space<vmem>>, %arg5: memref<1x128xf32, #tpu.memory_space<vmem>>, %arg6: memref<8x128xf32, #tpu.memory_space<vmem>>) attributes {dimension_semantics = [#tpu.dimension_semantics<parallel>], iteration_bounds = array<i64: 1>, scalar_prefetch = 0 : i64, scratch_operands = 0 : i64, tpu.core_type = #tpu.core_type<tc>, window_params = [{transform_indices = @transform_0, window_bounds = array<i64: 8, 11>}, {pipeline_mode = #tpu.pipeline_mode<synchronous>, transform_indices = @transform_1, window_bounds = array<i64: 11, 128>}, {pipeline_mode = #tpu.pipeline_mode<synchronous>, transform_indices = @transform_2, window_bounds = array<i64: 1, 128>}, {pipeline_mode = #tpu.pipeline_mode<synchronous>, transform_indices = @transform_3, window_bounds = array<i64: 128, 128>}, {pipeline_mode = #tpu.pipeline_mode<synchronous>, transform_indices = @transform_4, window_bounds = array<i64: 1, 128>}, {transform_indices = @transform_5, window_bounds = array<i64: 8, 128>}]} {
    %c0 = arith.constant 0 : index
    %c0_0 = arith.constant 0 : index
    %0 = vector.load %arg1[%c0, %c0_0] : memref<8x11xf32, #tpu.memory_space<vmem>>, vector<8x11xf32>
    %1 = arith.truncf %0 : vector<8x11xf32> to vector<8x11xbf16>
    %c0_1 = arith.constant 0 : index
    %c0_2 = arith.constant 0 : index
    %2 = vector.load %arg2[%c0_1, %c0_2] : memref<11x128xbf16, #tpu.memory_space<vmem>>, vector<11x128xbf16>
    %cst = arith.constant dense<0.000000e+00> : vector<8x128xf32>
    %3 = tpu.matmul %1, %2, %cst {dimension_numbers = #tpu.dot_dimension_numbers<[1], [0], [0], [1], [0, 0, 1, 1], [], []>} : vector<8x11xbf16>, vector<11x128xbf16>, vector<8x128xf32> -> vector<8x128xf32>
    %c0_3 = arith.constant 0 : index
    %c0_4 = arith.constant 0 : index
    %4 = vector.load %arg3[%c0_3, %c0_4] : memref<1x128xf32, #tpu.memory_space<vmem>>, vector<1x128xf32>
    %5 = vector.broadcast %4 : vector<1x128xf32> to vector<8x128xf32>
    %6 = arith.addf %3, %5 : vector<8x128xf32>
    %cst_5 = arith.constant 0.000000e+00 : f32
    %7 = vector.broadcast %cst_5 : f32 to vector<8x128xf32>
    %8 = arith.maximumf %6, %7 : vector<8x128xf32>
    %9 = arith.truncf %8 : vector<8x128xf32> to vector<8x128xbf16>
    %c0_6 = arith.constant 0 : index
    %c0_7 = arith.constant 0 : index
    %10 = vector.load %arg4[%c0_6, %c0_7] : memref<128x128xbf16, #tpu.memory_space<vmem>>, vector<128x128xbf16>
    %cst_8 = arith.constant dense<0.000000e+00> : vector<8x128xf32>
    %11 = tpu.matmul %9, %10, %cst_8 {dimension_numbers = #tpu.dot_dimension_numbers<[1], [0], [0], [1], [0, 0, 1, 1], [], []>} : vector<8x128xbf16>, vector<128x128xbf16>, vector<8x128xf32> -> vector<8x128xf32>
    %c0_9 = arith.constant 0 : index
    %c0_10 = arith.constant 0 : index
    %12 = vector.load %arg5[%c0_9, %c0_10] : memref<1x128xf32, #tpu.memory_space<vmem>>, vector<1x128xf32>
    %13 = vector.broadcast %12 : vector<1x128xf32> to vector<8x128xf32>
    %14 = arith.addf %11, %13 : vector<8x128xf32>
    %c0_11 = arith.constant 0 : index
    %c0_12 = arith.constant 0 : index
    %15 = vector.load %arg6[%c0_11, %c0_12] : memref<8x128xf32, #tpu.memory_space<vmem>>, vector<8x128xf32>
    tpu.vector_store %arg6[%c0_11, %c0_12], %14 {strides = array<i32>} : memref<8x128xf32, #tpu.memory_space<vmem>>, vector<8x128xf32>,
    return
  }
  func.func @transform_0(%arg0: i32) -> (i32, i32) {
    %c0_i32 = arith.constant 0 : i32
    %c0_i32_0 = arith.constant 0 : i32
    return %arg0, %c0_i32 : i32, i32
  }
  func.func @transform_1(%arg0: i32) -> (i32, i32) {
    %c0_i32 = arith.constant 0 : i32
    %c0_i32_0 = arith.constant 0 : i32
    %c0_i32_1 = arith.constant 0 : i32
    return %c0_i32, %c0_i32_0 : i32, i32
  }
  func.func @transform_2(%arg0: i32) -> (i32, i32) {
    %c0_i32 = arith.constant 0 : i32
    %c0_i32_0 = arith.constant 0 : i32
    %c0_i32_1 = arith.constant 0 : i32
    return %c0_i32, %c0_i32_0 : i32, i32
  }
  func.func @transform_3(%arg0: i32) -> (i32, i32) {
    %c0_i32 = arith.constant 0 : i32
    %c0_i32_0 = arith.constant 0 : i32
    %c0_i32_1 = arith.constant 0 : i32
    return %c0_i32, %c0_i32_0 : i32, i32
  }
  func.func @transform_4(%arg0: i32) -> (i32, i32) {
    %c0_i32 = arith.constant 0 : i32
    %c0_i32_0 = arith.constant 0 : i32
    %c0_i32_1 = arith.constant 0 : i32
    return %c0_i32, %c0_i32_0 : i32, i32
  }
  func.func @transform_5(%arg0: i32) -> (i32, i32) {
    %c0_i32 = arith.constant 0 : i32
    %c0_i32_0 = arith.constant 0 : i32
    return %arg0, %c0_i32 : i32, i32
  }
}

module attributes {stable_mosaic.version = 11 : i64} {
  func.func @_qnet_kernel(%arg0: i32, %arg1: memref<8x11xf32, #tpu.memory_space<vmem>>, %arg2: memref<11x128xbf16, #tpu.memory_space<vmem>>, %arg3: memref<1x128xf32, #tpu.memory_space<vmem>>, %arg4: memref<128x128xbf16, #tpu.memory_space<vmem>>, %arg5: memref<1x128xf32, #tpu.memory_space<vmem>>, %arg6: memref<8x128xf32, #tpu.memory_space<vmem>>) attributes {dimension_semantics = [#tpu.dimension_semantics<parallel>], iteration_bounds = array<i64: 1>, scalar_prefetch = 0 : i64, scratch_operands = 0 : i64, tpu.core_type = #tpu.core_type<tc>, window_params = [{transform_indices = @transform_0, window_bounds = array<i64: 8, 11>}, {pipeline_mode = #tpu.pipeline_mode<synchronous>, transform_indices = @transform_1, window_bounds = array<i64: 11, 128>}, {pipeline_mode = #tpu.pipeline_mode<synchronous>, transform_indices = @transform_2, window_bounds = array<i64: 1, 128>}, {pipeline_mode = #tpu.pipeline_mode<synchronous>, transform_indices = @transform_3, window_bounds = array<i64: 128, 128>}, {pipeline_mode = #tpu.pipeline_mode<synchronous>, transform_indices = @transform_4, window_bounds = array<i64: 1, 128>}, {transform_indices = @transform_5, window_bounds = array<i64: 8, 128>}]} {
    %c0 = arith.constant 0 : index
    %c0_0 = arith.constant 0 : index
    %0 = vector.load %arg1[%c0, %c0_0] : memref<8x11xf32, #tpu.memory_space<vmem>>, vector<8x11xf32>
    %1 = arith.truncf %0 : vector<8x11xf32> to vector<8x11xbf16>
    %c0_1 = arith.constant 0 : index
    %c0_2 = arith.constant 0 : index
    %2 = vector.load %arg2[%c0_1, %c0_2] : memref<11x128xbf16, #tpu.memory_space<vmem>>, vector<11x128xbf16>
    %cst = arith.constant dense<0.000000e+00> : vector<8x128xf32>
    %3 = tpu.matmul %1, %2, %cst {dimension_numbers = #tpu.dot_dimension_numbers<[1], [0], [0], [1], [0, 0, 1, 1], [], []>} : vector<8x11xbf16>, vector<11x128xbf16>, vector<8x128xf32> -> vector<8x128xf32>
    %c0_3 = arith.constant 0 : index
    %c0_4 = arith.constant 0 : index
    %4 = vector.load %arg3[%c0_3, %c0_4] : memref<1x128xf32, #tpu.memory_space<vmem>>, vector<1x128xf32>
    %5 = vector.broadcast %4 : vector<1x128xf32> to vector<8x128xf32>
    %6 = arith.addf %3, %5 : vector<8x128xf32>
    %cst_5 = arith.constant 0.000000e+00 : f32
    %7 = vector.broadcast %cst_5 : f32 to vector<8x128xf32>
    %8 = arith.maximumf %6, %7 : vector<8x128xf32>
    %9 = arith.truncf %8 : vector<8x128xf32> to vector<8x128xbf16>
    %c0_6 = arith.constant 0 : index
    %c0_7 = arith.constant 0 : index
    %10 = vector.load %arg4[%c0_6, %c0_7] : memref<128x128xbf16, #tpu.memory_space<vmem>>, vector<128x128xbf16>
    %cst_8 = arith.constant dense<0.000000e+00> : vector<8x128xf32>
    %11 = tpu.matmul %9, %10, %cst_8 {dimension_numbers = #tpu.dot_dimension_numbers<[1], [0], [0], [1], [0, 0, 1, 1], [], []>} : vector<8x128xbf16>, vector<128x128xbf16>, vector<8x128xf32> -> vector<8x128xf32>
    %c0_9 = arith.constant 0 : index
    %c0_10 = arith.constant 0 : index
    %12 = vector.load %arg5[%c0_9, %c0_10] : memref<1x128xf32, #tpu.memory_space<vmem>>, vector<1x128xf32>
    %13 = vector.broadcast %12 : vector<1x128xf32> to vector<8x128xf32>
    %14 = arith.addf %11, %13 : vector<8x128xf32>
    %c0_11 = arith.constant 0 : index
    %c0_12 = arith.constant 0 : index
    %15 = vector.load %arg6[%c0_11, %c0_12] : memref<8x128xf32, #tpu.memory_space<vmem>>, vector<8x128xf32>
    tpu.vector_store %arg6[%c0_11, %c0_12], %14 {strides = array<i32>} : memref<8x128xf32, #tpu.memory_space<vmem>>, vector<8x128xf32>,
    return
  }
  func.func @transform_0(%arg0: i32) -> (i32, i32) {
    %c0_i32 = arith.constant 0 : i32
    %c0_i32_0 = arith.constant 0 : i32
    return %arg0, %c0_i32 : i32, i32
  }
  func.func @transform_1(%arg0: i32) -> (i32, i32) {
    %c0_i32 = arith.constant 0 : i32
    %c0_i32_0 = arith.constant 0 : i32
    %c0_i32_1 = arith.constant 0 : i32
    return %c0_i32, %c0_i32_0 : i32, i32
  }
  func.func @transform_2(%arg0: i32) -> (i32, i32) {
    %c0_i32 = arith.constant 0 : i32
    %c0_i32_0 = arith.constant 0 : i32
    %c0_i32_1 = arith.constant 0 : i32
    return %c0_i32, %c0_i32_0 : i32, i32
  }
  func.func @transform_3(%arg0: i32) -> (i32, i32) {
    %c0_i32 = arith.constant 0 : i32
    %c0_i32_0 = arith.constant 0 : i32
    %c0_i32_1 = arith.constant 0 : i32
    return %c0_i32, %c0_i32_0 : i32, i32
  }
  func.func @transform_4(%arg0: i32) -> (i32, i32) {
    %c0_i32 = arith.constant 0 : i32
    %c0_i32_0 = arith.constant 0 : i32
    %c0_i32_1 = arith.constant 0 : i32
    return %c0_i32, %c0_i32_0 : i32, i32
  }
  func.func @transform_5(%arg0: i32) -> (i32, i32) {
    %c0_i32 = arith.constant 0 : i32
    %c0_i32_0 = arith.constant 0 : i32
    return %arg0, %c0_i32 : i32, i32
  }
}

</mosaic_0001>

<bundles_post_ra>
// kernel: _qnet_forward_padded.1
= control target key start
LH: loop header
LB: loop body
LE: loop exit
PB: predicated region body
PF: predicated region fallthrough
CT: control target
= control target key end

     0   :  { %10 = vsyncpa [#allocation3], 0  ;;  %s337_s0 = inlined_call_operand.vmem [shape: f32[8,11], index: 0, kind: input, shape index: {}]   ;;  %s338_s1 = inlined_call_operand.vmem [shape: bf16[11,128], index: 1, kind: input, shape index: {}]   ;;  %s339_s2 = inlined_call_operand.vmem [shape: f32[1,128], index: 2, kind: input, shape index: {}]   ;;  %s340_s3 = inlined_call_operand.hbm [shape: bf16[128,128], index: 3, kind: input, shape index: {}]   ;;  %s341_s4 = inlined_call_operand.vmem [shape: f32[1,128], index: 4, kind: input, shape index: {}]   ;;  %s342_s5 = inlined_call_operand.hbm [shape: f32[8,128], index: 5, kind: output, shape index: {}]  }
   0x1   :  { %11 = vsyncpa [#allocation4], 0  ;;  %s22_s20 = sshll.u32 %s340_s3, 4  ;;  %s281_s21 = smov [#allocation2]   ;;  %s23_s20 = int_to_ptr.hbm [resolvable:$true] %s22_s20 }
   0x2   :  { %s24_s22 = sshll.u32 %s281_s21, 4  ;;  %s282_s23 = smov 64   ;;  %s25_s22 = int_to_ptr.vmem [resolvable:$true] %s24_s22 }
   0x3   :  { %s283_s24 = smov 4  }
   0x4   :  { %30 = dma.hbm_to_vmem [thread:$0]  %s23_s20, 1024, %s25_s22, [#allocation3], %s282_s23, %s282_s23, %s283_s24  }
   0x5   :  { %277 = dma.done.wait [#allocation3], 1024  }
   0x6   :  { %278 = vsyncadd [#allocation3], 4294966272  ;;  %vm55_vm0 = vcmask 1044480   ;;  %vm56_vm1 = vcmask 1045504   ;;  %v284_v0 = vmov 65535   ;;  %v38_v6 = vld [vmem:[%s337_s0] sm:$0xff] }
   0x7   :  { %v57_v1 = vsel %vm55_vm0, 4294967295, %v284_v0  ;;  %v178_v2 = vld [vmem:[%s338_s1] sm:$0xf]  ;;  %v213_v3 = vld [vmem:[%s338_s1] sm:$0x30]  ;;  %v221_v7 = vld [vmem:[#allocation2 + $0x38] sm:$0xff]  ;;  %v39_v10 = vpack.c.bf16 %v38_v6, %v38_v6 }
   0x8   :  { %v58_v4 = vsel %vm56_vm1, %v57_v1, 0  ;;  %v179_v5 = vor.u32 %v213_v3, %v178_v2  ;;  %145 = vmatpush.bf16.msra.mxu1 %v221_v7  ;;  %v220_v9 = vld [vmem:[#allocation2 + $0x30] sm:$0xff]  ;;  %vm51_vm2 = vcmask 89088   ;;  %v219_v11 = vld [vmem:[#allocation2 + $0x28] sm:$0xff]  ;;  %v218_v12 = vld [vmem:[#allocation2 + $0x20] sm:$0xff]  ;;  %s285_s7 = smov [#allocation5]  }
   0x9   :  { %v217_v13 = vld [vmem:[#allocation2 + $0x18] sm:$0xff]  ;;  %v216_v14 = vld [vmem:[#allocation2 + $0x10] sm:$0xff]  ;;  %v215_v15 = vld [vmem:[#allocation2 + $0x8] sm:$0xff]  ;;  %s164_s8 = sshll.u32 %s285_s7, 4  ;;  %s166_s11 = sshll.u32 %s342_s5, 4  ;;  %s165_s8 = int_to_ptr.vmem [resolvable:$true] %s164_s8  ;;  %s167_s11 = int_to_ptr.hbm [resolvable:$true] %s166_s11 }
   0xa   :  { %v60_v8 = vand.u32 %v179_v5, %v58_v4  ;;  %v214_v16 = vld [vmem:[#allocation2] sm:$0xff] }
   0xb   :  { %v227_v17 = vld [vmem:[%s339_s2] ss:$0 sm:$0xff] }
   0xc   :  { %69 = vmatpush.bf16.msra.mxu0 %v60_v8  ;;  %146 = vmatpush.bf16.msra.mxu1 %v220_v9  ;;  %v228_v23 = vld [vmem:[%s341_s4] ss:$0 sm:$0xff] }
   0xf   :  { %180 = vmatmul.msk.bf16.vlgmr.msra.gmra.mxu0 %vm51_vm2, %v39_v10 }
  0x10   :  { %147 = vmatpush.bf16.msra.mxu1 %v219_v11 }
  0x14   :  { %148 = vmatpush.bf16.msra.mxu1 %v218_v12 }
  0x18   :  { %149 = vmatpush.bf16.msra.mxu1 %v217_v13 }
  0x1c   :  { %150 = vmatpush.bf16.msra.mxu1 %v216_v14 }
  0x20   :  { %151 = vmatpush.bf16.msra.mxu1 %v215_v15 }
  0x24   :  { %152 = vmatpush.bf16.msra.mxu1 %v214_v16 }
  0x8c   :  { %v71_v18 = vpop.f32.mrf.mxu0 }
  0x8d   :  { %v72_v19 = vadd.f32 %v227_v17, %v71_v18 }
  0x8f   :  { %v75_v20 = vmax.f32 %v72_v19, 0.0 }
  0x91   :  { %v76_v21 = vpack.c.bf16 %v75_v20, %v75_v20 }
  0x93   :  { %153 = vmatmul.bf16.vlgmr.msra.gmra.mxu1 %v76_v21 }
  0x94   :  { %v73_v22 = vpop.f32.mrf.mxu0 }
 0x110   :  { %v154_v24 = vpop.f32.mrf.mxu1 }
 0x111   :  { %v155_v25 = vadd.f32 %v228_v23, %v154_v24 }
 0x113   :  { %158 = vst [vmem:[#allocation5] sm:$0xff] %v155_v25 }
 0x114   :  { %169 = dma.vmem_to_hbm [thread:$0]  %s165_s8, 128, %s167_s11, [#allocation4]  }
 0x118   :  { %v156_v26 = vpop.f32.mrf.mxu1 }
 0x119   :  { %279 = dma.done.wait [#allocation4], 128  }
 0x11a   :  { %280 = vsyncadd [#allocation4], 4294967168 }
 0x11b   :  { %174 = vsyncpa [#allocation3], 1 }
 0x11c   :  { %175 = vsyncpa [#allocation4], 1 }

// kernel: _qnet_forward_padded.1
= control target key start
LH: loop header
LB: loop body
LE: loop exit
PB: predicated region body
PF: predicated region fallthrough
CT: control target
= control target key end

     0   :  { %10 = vsyncpa [#allocation3], 0  ;;  %s337_s0 = inlined_call_operand.vmem [shape: f32[8,11], index: 0, kind: input, shape index: {}]   ;;  %s338_s1 = inlined_call_operand.vmem [shape: bf16[11,128], index: 1, kind: input, shape index: {}]   ;;  %s339_s2 = inlined_call_operand.vmem [shape: f32[1,128], index: 2, kind: input, shape index: {}]   ;;  %s340_s3 = inlined_call_operand.hbm [shape: bf16[128,128], index: 3, kind: input, shape index: {}]   ;;  %s341_s4 = inlined_call_operand.vmem [shape: f32[1,128], index: 4, kind: input, shape index: {}]   ;;  %s342_s5 = inlined_call_operand.hbm [shape: f32[8,128], index: 5, kind: output, shape index: {}]  }
   0x1   :  { %11 = vsyncpa [#allocation4], 0  ;;  %s22_s20 = sshll.u32 %s340_s3, 4  ;;  %s281_s21 = smov [#allocation2]   ;;  %s23_s20 = int_to_ptr.hbm [resolvable:$true] %s22_s20 }
   0x2   :  { %s24_s22 = sshll.u32 %s281_s21, 4  ;;  %s282_s23 = smov 64   ;;  %s25_s22 = int_to_ptr.vmem [resolvable:$true] %s24_s22 }
   0x3   :  { %s283_s24 = smov 4  }
   0x4   :  { %30 = dma.hbm_to_vmem [thread:$0]  %s23_s20, 1024, %s25_s22, [#allocation3], %s282_s23, %s282_s23, %s283_s24  }
   0x5   :  { %277 = dma.done.wait [#allocation3], 1024  }
   0x6   :  { %278 = vsyncadd [#allocation3], 4294966272  ;;  %vm55_vm0 = vcmask 1044480   ;;  %vm56_vm1 = vcmask 1045504   ;;  %v284_v0 = vmov 65535   ;;  %v38_v6 = vld [vmem:[%s337_s0] sm:$0xff] }
   0x7   :  { %v57_v1 = vsel %vm55_vm0, 4294967295, %v284_v0  ;;  %v178_v2 = vld [vmem:[%s338_s1] sm:$0xf]  ;;  %v213_v3 = vld [vmem:[%s338_s1] sm:$0x30]  ;;  %v221_v7 = vld [vmem:[#allocation2 + $0x38] sm:$0xff]  ;;  %v39_v10 = vpack.c.bf16 %v38_v6, %v38_v6 }
   0x8   :  { %v58_v4 = vsel %vm56_vm1, %v57_v1, 0  ;;  %v179_v5 = vor.u32 %v213_v3, %v178_v2  ;;  %145 = vmatpush.bf16.msra.mxu1 %v221_v7  ;;  %v220_v9 = vld [vmem:[#allocation2 + $0x30] sm:$0xff]  ;;  %vm51_vm2 = vcmask 89088   ;;  %v219_v11 = vld [vmem:[#allocation2 + $0x28] sm:$0xff]  ;;  %v218_v12 = vld [vmem:[#allocation2 + $0x20] sm:$0xff]  ;;  %s285_s7 = smov [#allocation5]  }
   0x9   :  { %v217_v13 = vld [vmem:[#allocation2 + $0x18] sm:$0xff]  ;;  %v216_v14 = vld [vmem:[#allocation2 + $0x10] sm:$0xff]  ;;  %v215_v15 = vld [vmem:[#allocation2 + $0x8] sm:$0xff]  ;;  %s164_s8 = sshll.u32 %s285_s7, 4  ;;  %s166_s11 = sshll.u32 %s342_s5, 4  ;;  %s165_s8 = int_to_ptr.vmem [resolvable:$true] %s164_s8  ;;  %s167_s11 = int_to_ptr.hbm [resolvable:$true] %s166_s11 }
   0xa   :  { %v60_v8 = vand.u32 %v179_v5, %v58_v4  ;;  %v214_v16 = vld [vmem:[#allocation2] sm:$0xff] }
   0xb   :  { %v227_v17 = vld [vmem:[%s339_s2] ss:$0 sm:$0xff] }
   0xc   :  { %69 = vmatpush.bf16.msra.mxu0 %v60_v8  ;;  %146 = vmatpush.bf16.msra.mxu1 %v220_v9  ;;  %v228_v23 = vld [vmem:[%s341_s4] ss:$0 sm:$0xff] }
   0xf   :  { %180 = vmatmul.msk.bf16.vlgmr.msra.gmra.mxu0 %vm51_vm2, %v39_v10 }
  0x10   :  { %147 = vmatpush.bf16.msra.mxu1 %v219_v11 }
  0x14   :  { %148 = vmatpush.bf16.msra.mxu1 %v218_v12 }
  0x18   :  { %149 = vmatpush.bf16.msra.mxu1 %v217_v13 }
  0x1c   :  { %150 = vmatpush.bf16.msra.mxu1 %v216_v14 }
  0x20   :  { %151 = vmatpush.bf16.msra.mxu1 %v215_v15 }
  0x24   :  { %152 = vmatpush.bf16.msra.mxu1 %v214_v16 }
  0x8c   :  { %v71_v18 = vpop.f32.mrf.mxu0 }
  0x8d   :  { %v72_v19 = vadd.f32 %v227_v17, %v71_v18 }
  0x8f   :  { %v75_v20 = vmax.f32 %v72_v19, 0.0 }
  0x91   :  { %v76_v21 = vpack.c.bf16 %v75_v20, %v75_v20 }
  0x93   :  { %153 = vmatmul.bf16.vlgmr.msra.gmra.mxu1 %v76_v21 }
  0x94   :  { %v73_v22 = vpop.f32.mrf.mxu0 }
 0x110   :  { %v154_v24 = vpop.f32.mrf.mxu1 }
 0x111   :  { %v155_v25 = vadd.f32 %v228_v23, %v154_v24 }
 0x113   :  { %158 = vst [vmem:[#allocation5] sm:$0xff] %v155_v25 }
 0x114   :  { %169 = dma.vmem_to_hbm [thread:$0]  %s165_s8, 128, %s167_s11, [#allocation4]  }
 0x118   :  { %v156_v26 = vpop.f32.mrf.mxu1 }
 0x119   :  { %279 = dma.done.wait [#allocation4], 128  }
 0x11a   :  { %280 = vsyncadd [#allocation4], 4294967168 }
 0x11b   :  { %174 = vsyncpa [#allocation3], 1 }
 0x11c   :  { %175 = vsyncpa [#allocation4], 1 }

</bundles_post_ra>
